<compile_context>
chip_gen: v7x
topology: tpu7x:2x2x1
jax: 0.10.0
libtpu: 0.0.40
codegen_flags: <defaults>
</compile_context>

<pallas_src>
import jax
import jax.numpy as jnp
from jax import lax
from jax.experimental import pallas as pl
from jax.experimental.pallas import tpu as pltpu

NEG_SLOPE = 0.2
BN_EPS = 1e-5

_LANE = 128
_SUBLANE = 8
_MAX_TM_ROWS = 2048
_FALLBACK_VMEM_BYTES = 64 * 1024 * 1024   # v7x per-core VMEM (smallest across v5e/v6e/v7x)


def _round_up(x, m):
    return (x + m - 1) // m * m


def _vmem_caps():
    """(vmem_limit_bytes, per-step tile budget) derived from the actual chip."""
    try:
        cap = int(pltpu.get_tpu_info().vmem_capacity_bytes)
    except Exception:
        cap = _FALLBACK_VMEM_BYTES
    return int(cap * 0.75), int(cap * 0.55)


def _pick_t_ho(n, ho, wo_p, cin_p, coutp, budget, y_bytes):
    """Output-row tile: as large as possible while the double-buffered working set
    (S blocks, y blocks, resident weight, staged matmul LHS) fits the VMEM budget."""
    kkp = 16 * cin_p

    def est(t):
        tm = t * wo_p
        s_blk = t * _round_up(wo_p + 1, _SUBLANE) * 8 * cin_p * 2   # bf16 input tile
        y_blk = tm * coutp * y_bytes
        w_res = kkp * coutp * 2                                     # bf16 weight (resident)
        lhs = tm * kkp * 2                                          # staged patch slices
        return 2 * s_blk + 2 * y_blk + 2 * w_res + lhs + 8 * coutp * 4

    t = max(1, min(ho, _MAX_TM_ROWS // max(wo_p, 1)))
    while t > 1 and est(t) > budget:
        t = (t + 1) // 2
    if n == 1 and ho >= 2:        # ensure >= 2 parallel tiles so v7x megacore is used
        t = min(t, (ho + 1) // 2)
    return t


# ---------------- Pass 1: fused tap-gather + conv matmul + partial BN stats ----------------
def _conv_stats_kernel(s_ref, w_ref, y_ref, sum_ref, ssq_ref):
    # s_ref : (t_ho, wo_p + 1, 8*cin_p) bf16  half-im2col tile (LeakyReLU'd, padded input)
    # w_ref : (2, 8*cin_p, coutp)       bf16  reordered conv weight (kw-pairs on axis 0)
    # y_ref : (tm, coutp)               conv output WITHOUT bias (bias folded into shift)
    # sum_ref / ssq_ref : (1, 1, coutp) per-tile partial sum / sum of squares of y
    t_ho, jsz, cdim = s_ref.shape
    wo_p = jsz - 1
    tm = t_ho * wo_p
    # kw in {0,1}: taps live at column j ; kw in {2,3}: taps live at column j+1.
    left = s_ref[:, 0:wo_p, :].reshape(tm, cdim)
    right = s_ref[:, 1:wo_p + 1, :].reshape(tm, cdim)
    y = jnp.dot(left, w_ref[0], preferred_element_type=jnp.float32)
    y = y + jnp.dot(right, w_ref[1], preferred_element_type=jnp.float32)
    y_ref[...] = y.astype(y_ref.dtype)
    # Padded rows / cols / channels give all-zero patches and no bias is added here, so
    # they contribute exactly 0 to the partial stats; the glue divides by the true M.
    sum_ref[0, :, :] = jnp.sum(y, axis=0, keepdims=True)
    ssq_ref[0, :, :] = jnp.sum(y * y, axis=0, keepdims=True)


def unet_down_block(x, conv_w, conv_b, bn_gamma, bn_beta, *, y_dtype=jnp.float32):
    """x: (N, Cin, H, W) f32 NCHW. conv_w: (Cout, Cin, 4, 4). Returns (N, Cout, H/2, W/2) f32."""
    n, cin, h, w = x.shape
    cout, _, k, _ = conv_w.shape
    stride, pad = 2, 1
    ho = (h + 2 * pad - k) // stride + 1
    wo = (w + 2 * pad - k) // stride + 1
    m = n * ho * wo                                # true element count per channel (for BN)

    cin_p = _round_up(cin, 16)                     # 8*cin_p (lane dim of S) multiple of 128
    coutp = _round_up(cout, _LANE)
    wo_p = _round_up(wo, _SUBLANE)                 # keeps the in-kernel reshape layout-free
    kkp = k * k * cin_p                            # = 16 * cin_p

    vmem_limit, tile_budget = _vmem_caps()
    y_bytes = jnp.dtype(y_dtype).itemsize
    t_ho = _pick_t_ho(n, ho, wo_p, cin_p, coutp, tile_budget, y_bytes)
    ho_p = _round_up(ho, t_ho)
    n_h = ho_p // t_ho
    tm = t_ho * wo_p
    mp = n * ho_p * wo_p

    # ---- XLA prologue: LeakyReLU (f32) -> bf16 -> one padded half-im2col tensor S ----
    xr = jnp.where(x > 0, x, NEG_SLOPE * x).astype(jnp.bfloat16)
    # TODO(synk): Dropout2d(0.2) in training mode would zero whole channels with torch RNG;
    # eval-mode identity is used here.
    xhwc = jnp.transpose(xr, (0, 2, 3, 1))                                  # NHWC, bf16
    xp = jnp.pad(xhwc, ((0, 0),
                        (pad, 2 * ho_p + 2 - (h + pad)),
                        (pad, 2 * wo_p + 2 - (w + pad)),
                        (0, cin_p - cin)))
    # S[n, oh, j, (wp, kh, c)] = xp[n, 2*oh + kh, 2*j + wp, c]   (~2x input, bf16)
    s = jnp.concatenate(
        [xp[:, kh:kh + 2 * ho_p:2, wp:wp + 2 * wo_p + 1:2, :]
         for wp in (0, 1) for kh in range(k)],
        axis=-1)                                                            # (n, ho_p, wo_p+1, 8*cin_p)

    # Weight reordered to the patch column order (kw, kh, cin), split into the two
    # kw-pairs that the kernel reads from S columns j (kw 0,1) and j+1 (kw 2,3).
    w_r = jnp.transpose(conv_w, (3, 2, 1, 0))                               # (kw, kh, cin, cout)
    w_r = jnp.pad(w_r, ((0, 0), (0, 0), (0, cin_p - cin), (0, coutp - cout)))
    w_p = w_r.reshape(2, 8 * cin_p, coutp).astype(jnp.bfloat16)

    y_flat, part_sum, part_ssq = pl.pallas_call(
        _conv_stats_kernel,
        out_shape=(
            jax.ShapeDtypeStruct((mp, coutp), y_dtype),
            jax.ShapeDtypeStruct((n * n_h, 1, coutp), jnp.float32),
            jax.ShapeDtypeStruct((n * n_h, 1, coutp), jnp.float32),
        ),
        grid=(n, n_h),
        in_specs=[
            pl.BlockSpec((None, t_ho, wo_p + 1, 8 * cin_p), lambda b, i: (b, i, 0, 0)),
            pl.BlockSpec((2, 8 * cin_p, coutp), lambda b, i: (0, 0, 0)),
        ],
        out_specs=[
            pl.BlockSpec((tm, coutp), lambda b, i: (b * n_h + i, 0)),
            pl.BlockSpec((1, 1, coutp), lambda b, i: (b * n_h + i, 0, 0)),
            pl.BlockSpec((1, 1, coutp), lambda b, i: (b * n_h + i, 0, 0)),
        ],
        compiler_params=pltpu.CompilerParams(
            dimension_semantics=("parallel", "parallel"),
            vmem_limit_bytes=vmem_limit),
    )(s, w_p)

    # Tiny global reduction + fold conv bias / BN affine into one per-channel scale & shift.
    total = jnp.sum(part_sum[:, 0, :], axis=0)
    total_sq = jnp.sum(part_ssq[:, 0, :], axis=0)
    mean0 = total / m                                      # mean of y0 = conv without bias
    var = jnp.maximum(total_sq / m - mean0 * mean0, 0.0)   # bias shifts mean only, not var
    # TODO(synk): E[y^2]-E[y]^2 in f32 can lose precision for channels with mean >> std;
    # a shifted/Welford partial reduction would be more robust if that regime matters.
    b_p = jnp.pad(conv_b, (0, coutp - cout))
    g_p = jnp.pad(bn_gamma, (0, coutp - cout))
    be_p = jnp.pad(bn_beta, (0, coutp - cout))
    mean = mean0 + b_p                                     # mean of (conv + bias)
    scale = g_p * lax.rsqrt(var + BN_EPS)
    shift = be_p + (b_p - mean) * scale                    # out = y0 * scale + shift

    # Epilogue: the BN FMA is fused by XLA into the slice + NHWC->NCHW transpose, so y is
    # read exactly once and the NCHW output is written exactly once (no extra round trip).
    y4 = y_flat.reshape(n, ho_p, wo_p, coutp)
    z = (y4[:, :ho, :wo, :cout].astype(jnp.float32) * scale[:cout].reshape(1, 1, 1, cout)
         + shift[:cout].reshape(1, 1, 1, cout))
    return jnp.transpose(z, (0, 3, 1, 2))


# --------------------------------- references ---------------------------------
def _reference_f32(x, conv_w, conv_b, bn_gamma, bn_beta):
    """Full f32 reference of the same forward pass."""
    lr = jnp.where(x > 0, x, NEG_SLOPE * x)
    y = lax.conv_general_dilated(
        lr, conv_w, window_strides=(2, 2), padding=[(1, 1), (1, 1)],
        dimension_numbers=("NCHW", "OIHW", "NCHW"))
    y = y + conv_b.reshape(1, -1, 1, 1)
    mean = jnp.mean(y, axis=(0, 2, 3), keepdims=True)
    var = jnp.mean((y - mean) ** 2, axis=(0, 2, 3), keepdims=True)
    return (y - mean) * lax.rsqrt(var + BN_EPS) * bn_gamma.reshape(1, -1, 1, 1) \
        + bn_beta.reshape(1, -1, 1, 1)


def _reference_bf16(x, conv_w, conv_b, bn_gamma, bn_beta):
    """Reference with the same bf16-operand / f32-accumulate matmul precision as the kernel."""
    lr = jnp.where(x > 0, x, NEG_SLOPE * x).astype(jnp.bfloat16)
    y = lax.conv_general_dilated(
        lr, conv_w.astype(jnp.bfloat16), window_strides=(2, 2), padding=[(1, 1), (1, 1)],
        dimension_numbers=("NCHW", "OIHW", "NCHW"),
        preferred_element_type=jnp.float32)
    y = y + conv_b.reshape(1, -1, 1, 1)
    mean = jnp.mean(y, axis=(0, 2, 3), keepdims=True)
    var = jnp.mean((y - mean) ** 2, axis=(0, 2, 3), keepdims=True)
    return (y - mean) * lax.rsqrt(var + BN_EPS) * bn_gamma.reshape(1, -1, 1, 1) \
        + bn_beta.reshape(1, -1, 1, 1)


if __name__ == "__main__":
    key = jax.random.PRNGKey(0)
    k_x, k_w, k_b, k_g, k_be = jax.random.split(key, 5)

    N, CIN, H, W = 2, 4, 16, 16
    COUT, K = 8, 4

    x = jax.random.normal(k_x, (N, CIN, H, W), dtype=jnp.float32)
    conv_w = jax.random.normal(k_w, (COUT, CIN, K, K), dtype=jnp.float32) * 0.1
    conv_b = jax.random.normal(k_b, (COUT,), dtype=jnp.float32) * 0.1
    bn_gamma = 1.0 + 0.1 * jax.random.normal(k_g, (COUT,), dtype=jnp.float32)
    bn_beta = 0.1 * jax.random.normal(k_be, (COUT,), dtype=jnp.float32)

    out = jax.jit(unet_down_block)(x, conv_w, conv_b, bn_gamma, bn_beta)
    out = jax.block_until_ready(out)

    assert out.shape == (N, COUT, H // 2, W // 2), out.shape

    ref_bf16 = _reference_bf16(x, conv_w, conv_b, bn_gamma, bn_beta)
    ref_f32 = _reference_f32(x, conv_w, conv_b, bn_gamma, bn_beta)
    # Tight check vs the precision-matched (bf16 operands, f32 accumulate) reference.
    assert jnp.allclose(out, ref_bf16, atol=2e-3, rtol=2e-3), \
        float(jnp.max(jnp.abs(out - ref_bf16)))
    # Loose check vs the full-f32 reference (expected bf16-level deviation only).
    assert jnp.allclose(out, ref_f32, atol=5e-2, rtol=5e-2), \
        float(jnp.max(jnp.abs(out - ref_f32)))
    print("KERNEL_OK")
</pallas_src>

<mosaic_0001>
module attributes {stable_mosaic.version = 11 : i64} {
  func.func @_conv_stats_kernel(%arg0: i32, %arg1: i32, %arg2: memref<1x8x9x128xbf16, #tpu.memory_space<vmem>>, %arg3: memref<2x128x128xbf16, #tpu.memory_space<vmem>>, %arg4: memref<64x128xf32, #tpu.memory_space<vmem>>, %arg5: memref<1x1x128xf32, #tpu.memory_space<vmem>>, %arg6: memref<1x1x128xf32, #tpu.memory_space<vmem>>) attributes {dimension_semantics = [#tpu.dimension_semantics<parallel>, #tpu.dimension_semantics<parallel>], iteration_bounds = array<i64: 2, 1>, scalar_prefetch = 0 : i64, scratch_operands = 0 : i64, tpu.core_type = #tpu.core_type<tc>, window_params = [{transform_indices = @transform_0, window_bounds = array<i64: 1, 8, 9, 128>}, {pipeline_mode = #tpu.pipeline_mode<synchronous>, transform_indices = @transform_1, window_bounds = array<i64: 2, 128, 128>}, {transform_indices = @transform_2, window_bounds = array<i64: 64, 128>}, {transform_indices = @transform_3, window_bounds = array<i64: 1, 1, 128>}, {transform_indices = @transform_4, window_bounds = array<i64: 1, 1, 128>}]} {
    %c0 = arith.constant 0 : index
    %c0_0 = arith.constant 0 : index
    %c0_1 = arith.constant 0 : index
    %c0_2 = arith.constant 0 : index
    %0 = vector.load %arg2[%c0, %c0_0, %c0_1, %c0_2] : memref<1x8x9x128xbf16, #tpu.memory_space<vmem>>, vector<1x8x8x128xbf16>
    %1 = vector.shape_cast %0 : vector<1x8x8x128xbf16> to vector<8x8x128xbf16>
    %2 = vector.shape_cast %1 : vector<8x8x128xbf16> to vector<64x128xbf16>
    %c0_3 = arith.constant 0 : index
    %c0_4 = arith.constant 0 : index
    %c1 = arith.constant 1 : index
    %c0_5 = arith.constant 0 : index
    %3 = vector.load %arg2[%c0_3, %c0_4, %c1, %c0_5] : memref<1x8x9x128xbf16, #tpu.memory_space<vmem>>, vector<1x8x8x128xbf16>
    %4 = vector.shape_cast %3 : vector<1x8x8x128xbf16> to vector<8x8x128xbf16>
    %5 = vector.shape_cast %4 : vector<8x8x128xbf16> to vector<64x128xbf16>
    %c0_6 = arith.constant 0 : index
    %c0_7 = arith.constant 0 : index
    %c0_8 = arith.constant 0 : index
    %6 = vector.load %arg3[%c0_6, %c0_7, %c0_8] : memref<2x128x128xbf16, #tpu.memory_space<vmem>>, vector<1x128x128xbf16>
    %7 = vector.shape_cast %6 : vector<1x128x128xbf16> to vector<128x128xbf16>
    %cst = arith.constant dense<0.000000e+00> : vector<64x128xf32>
    %8 = tpu.matmul %2, %7, %cst {dimension_numbers = #tpu.dot_dimension_numbers<[1], [0], [0], [1], [0, 0, 1, 1], [], []>} : vector<64x128xbf16>, vector<128x128xbf16>, vector<64x128xf32> -> vector<64x128xf32>
    %c1_9 = arith.constant 1 : index
    %c0_10 = arith.constant 0 : index
    %c0_11 = arith.constant 0 : index
    %9 = vector.load %arg3[%c1_9, %c0_10, %c0_11] : memref<2x128x128xbf16, #tpu.memory_space<vmem>>, vector<1x128x128xbf16>
    %10 = vector.shape_cast %9 : vector<1x128x128xbf16> to vector<128x128xbf16>
    %cst_12 = arith.constant dense<0.000000e+00> : vector<64x128xf32>
    %11 = tpu.matmul %5, %10, %cst_12 {dimension_numbers = #tpu.dot_dimension_numbers<[1], [0], [0], [1], [0, 0, 1, 1], [], []>} : vector<64x128xbf16>, vector<128x128xbf16>, vector<64x128xf32> -> vector<64x128xf32>
    %12 = arith.addf %8, %11 : vector<64x128xf32>
    %c0_13 = arith.constant 0 : index
    %c0_14 = arith.constant 0 : index
    %13 = vector.load %arg4[%c0_13, %c0_14] : memref<64x128xf32, #tpu.memory_space<vmem>>, vector<64x128xf32>
    tpu.vector_store %arg4[%c0_13, %c0_14], %12 {strides = array<i32>} : memref<64x128xf32, #tpu.memory_space<vmem>>, vector<64x128xf32>,
    %cst_15 = arith.constant dense<0.000000e+00> : vector<128xf32>
    %14 = vector.multi_reduction <add>, %12, %cst_15 [0] : vector<64x128xf32> to vector<128xf32>
    %15 = vector.shape_cast %14 : vector<128xf32> to vector<1x128xf32>
    %c0_16 = arith.constant 0 : index
    %c0_17 = arith.constant 0 : index
    %c0_18 = arith.constant 0 : index
    %16 = vector.load %arg5[%c0_16, %c0_17, %c0_18] : memref<1x1x128xf32, #tpu.memory_space<vmem>>, vector<1x1x128xf32>
    %17 = vector.shape_cast %16 : vector<1x1x128xf32> to vector<1x128xf32>
    %18 = vector.shape_cast %15 : vector<1x128xf32> to vector<1x1x128xf32>
    tpu.vector_store %arg5[%c0_16, %c0_17, %c0_18], %18 {strides = array<i32>} : memref<1x1x128xf32, #tpu.memory_space<vmem>>, vector<1x1x128xf32>,
    %19 = arith.mulf %12, %12 : vector<64x128xf32>
    %cst_19 = arith.constant dense<0.000000e+00> : vector<128xf32>
    %20 = vector.multi_reduction <add>, %19, %cst_19 [0] : vector<64x128xf32> to vector<128xf32>
    %21 = vector.shape_cast %20 : vector<128xf32> to vector<1x128xf32>
    %c0_20 = arith.constant 0 : index
    %c0_21 = arith.constant 0 : index
    %c0_22 = arith.constant 0 : index
    %22 = vector.load %arg6[%c0_20, %c0_21, %c0_22] : memref<1x1x128xf32, #tpu.memory_space<vmem>>, vector<1x1x128xf32>
    %23 = vector.shape_cast %22 : vector<1x1x128xf32> to vector<1x128xf32>
    %24 = vector.shape_cast %21 : vector<1x128xf32> to vector<1x1x128xf32>
    tpu.vector_store %arg6[%c0_20, %c0_21, %c0_22], %24 {strides = array<i32>} : memref<1x1x128xf32, #tpu.memory_space<vmem>>, vector<1x1x128xf32>,
    return
  }
  func.func @transform_0(%arg0: i32, %arg1: i32) -> (i32, i32, i32, i32) {
    %c0_i32 = arith.constant 0 : i32
    %c0_i32_0 = arith.constant 0 : i32
    %c0_i32_1 = arith.constant 0 : i32
    return %arg0, %arg1, %c0_i32, %c0_i32_0 : i32, i32, i32, i32
  }
  func.func @transform_1(%arg0: i32, %arg1: i32) -> (i32, i32, i32) {
    %c0_i32 = arith.constant 0 : i32
    %c0_i32_0 = arith.constant 0 : i32
    %c0_i32_1 = arith.constant 0 : i32
    %c0_i32_2 = arith.constant 0 : i32
    return %c0_i32, %c0_i32_0, %c0_i32_1 : i32, i32, i32
  }
  func.func @transform_2(%arg0: i32, %arg1: i32) -> (i32, i32) {
    %c1_i32 = arith.constant 1 : i32
    %0 = arith.muli %arg0, %c1_i32 : i32
    %1 = arith.addi %0, %arg1 : i32
    %c0_i32 = arith.constant 0 : i32
    %c0_i32_0 = arith.constant 0 : i32
    return %1, %c0_i32 : i32, i32
  }
  func.func @transform_3(%arg0: i32, %arg1: i32) -> (i32, i32, i32) {
    %c1_i32 = arith.constant 1 : i32
    %0 = arith.muli %arg0, %c1_i32 : i32
    %1 = arith.addi %0, %arg1 : i32
    %c0_i32 = arith.constant 0 : i32
    %c0_i32_0 = arith.constant 0 : i32
    %c0_i32_1 = arith.constant 0 : i32
    return %1, %c0_i32, %c0_i32_0 : i32, i32, i32
  }
  func.func @transform_4(%arg0: i32, %arg1: i32) -> (i32, i32, i32) {
    %c1_i32 = arith.constant 1 : i32
    %0 = arith.muli %arg0, %c1_i32 : i32
    %1 = arith.addi %0, %arg1 : i32
    %c0_i32 = arith.constant 0 : i32
    %c0_i32_0 = arith.constant 0 : i32
    %c0_i32_1 = arith.constant 0 : i32
    return %1, %c0_i32, %c0_i32_0 : i32, i32, i32
  }
}

</mosaic_0001>

<bundles_post_ra>
// kernel: unet_down_block.1
= control target key start
LH: loop header
LB: loop body
LE: loop exit
PB: predicated region body
PF: predicated region fallthrough
CT: control target
= control target key end

     0   :  { %s1095_s15 = smov 0   ;;  %s1097_s16 = smov 0   ;;  %s1262_s0 = inlined_call_operand.vmem [shape: bf16[2,8,9,128], index: 0, kind: input, shape index: {}]   ;;  %s1263_s1 = inlined_call_operand.vmem [shape: bf16[2,128,128], index: 1, kind: input, shape index: {}]   ;;  %s1264_s2 = inlined_call_operand.vmem [shape: f32[128,128], index: 2, kind: output, shape index: {0}]   ;;  %s1265_s3 = inlined_call_operand.vmem [shape: f32[2,1,128], index: 3, kind: output, shape index: {1}]   ;;  %s1266_s4 = inlined_call_operand.vmem [shape: f32[2,1,128], index: 4, kind: output, shape index: {2}]  }
   0x1   :  { %s1099_s17 = smov 0  }
   0x2 LB: > { %s27_s18 = sadd.s32 1, %s1064_s16  ;;  %p874_p0 = scmp.ge.s32.totalorder %s1068_s17, 1  ;;  %s1068_s17 = sphi %s1099_s17, %s15_s17   ;;  %s1064_s16 = sphi %s1097_s16, %s1270_s16   ;;  %s1060_s15 = sphi %s1095_s15, %s1269_s15  }
   0x3   : > { %p29_p1 = scmp.ge.s32.totalorder %s27_s18, 2  ;;  %p193_p2 = scmp.lt.s32.totalorder %s1068_s17, 3 }
   0x5   : > { %s1272_s18 = smov (%p29_p1, %s27_s18), 0  ;;  %p194_p3 = pnand %p874_p0, %p193_p2 }
   0x6   : > { %v1026_v0 = vld [vmem:[%s1263_s1 + $0x40] sm:$0xff] (!%p194_p3)   ;;  %v1028_v2 = vld [vmem:[%s1263_s1 + $0x48] sm:$0xff] (!%p194_p3)   ;;  %p234_p4 = scmp.lt.s32.totalorder (!%p194_p3), %s1060_s15, 1  ;;  %v1030_v4 = vld [vmem:[%s1263_s1 + $0x50] sm:$0xff] (!%p194_p3)   ;;  %vm279_vm0 = vsmask.f32 (!%p194_p3), 3328 }
   0x7   : > { %197 = sbr.rel (%p194_p3) target bundleno = 286 (0x11e), region = 28  ;;  %v1027_v1 = vld [vmem:[%s1263_s1] sm:$0xff] (!%p194_p3)   ;;  %946 = vmatprep.subr.bf16.mxu1 (!%p194_p3), %v1026_v0  ;;  %v1029_v3 = vld [vmem:[%s1263_s1 + $0x8] sm:$0xff] (!%p194_p3)   ;;  %v1031_v5 = vld [vmem:[%s1263_s1 + $0x10] sm:$0xff] (!%p194_p3)   ;;  %vm280_vm1 = vsmask.f32 (!%p194_p3), 7440 }
   0x8   : > { %970 = vmatprep.subr.bf16.mxu0 (!%p194_p3), %v1027_v1  ;;  %947 = vmatpush3.bf16.msra.mxu1 (!%p194_p3), %v1026_v0  ;;  %v1032_v6 = vld [vmem:[%s1263_s1 + $0x58] sm:$0xff] (!%p194_p3)   ;;  %v1034_v8 = vld [vmem:[%s1263_s1 + $0x60] sm:$0xff] (!%p194_p3)   ;;  %v1036_v10 = vld [vmem:[%s1263_s1 + $0x68] sm:$0xff] (!%p194_p3)   ;;  %s877_s9 = sshll.u32 (!%p194_p3), %s1060_s15, 3 }
   0x9   : > { %971 = vmatpush3.bf16.msra.mxu0 (!%p194_p3), %v1027_v1  ;;  %948 = vmatprep.subr.bf16.mxu1 (!%p194_p3), %v1028_v2  ;;  %v1033_v7 = vld [vmem:[%s1263_s1 + $0x18] sm:$0xff] (!%p194_p3)   ;;  %v1035_v9 = vld [vmem:[%s1263_s1 + $0x20] sm:$0xff] (!%p194_p3)   ;;  %v1037_v11 = vld [vmem:[%s1263_s1 + $0x28] sm:$0xff] (!%p194_p3)   ;;  %p246_p5 = scmp.lt.s32.totalorder (!%p194_p3), %s877_s9, 15 }
   0xa   : > { %972 = vmatprep.subr.bf16.mxu0 (!%p194_p3), %v1029_v3  ;;  %v1038_v17 = vld [vmem:[%s1263_s1 + $0x70] sm:$0xff] (!%p194_p3)   ;;  %v1040_v42 = vld [vmem:[%s1263_s1 + $0x78] sm:$0xff] (!%p194_p3)   ;;  %vm1191_vm2 = vmor (!%p194_p3), %vm279_vm0, %vm280_vm1 }
   0xb   : > { %v1039_v32 = vld [vmem:[%s1263_s1 + $0x30] sm:$0xff] (!%p194_p3)   ;;  %v1041_v54 = vld [vmem:[%s1263_s1 + $0x38] sm:$0xff] (!%p194_p3)  }
   0xc   : > { %949 = vmatpush3.bf16.msra.mxu1 (!%p194_p3), %v1028_v2 }
   0xd   : > { %973 = vmatpush3.bf16.msra.mxu0 (!%p194_p3), %v1029_v3  ;;  %950 = vmatprep.subr.bf16.mxu1 (!%p194_p3), %v1030_v4 }
   0xe   : > { %s1135_s5 = scalar_select %p234_p4, %s1060_s15, 1  ;;  %974 = vmatprep.subr.bf16.mxu0 %v1031_v5 }
   0xf   : > { %s1274_s9 = smov (!%p246_p5, %s877_s9), 15 }
  0x10   : > { %s921_s10 = sshll.u32 %s1135_s5, 6  ;;  %951 = vmatpush3.bf16.msra.mxu1 %v1030_v4  ;;  %s255_s19 = scalar_lea.vmem %s1265_s3, %s1135_s5 }
  0x11   : > { %975 = vmatpush3.bf16.msra.mxu0 %v1031_v5  ;;  %952 = vmatprep.subr.bf16.mxu1 %v1032_v6  ;;  %s1153_s21 = scalar_lea.vmem %s1262_s0, %s921_s10  ;;  %s878_s10 = sshll.u32 %s1274_s9, 3 }
  0x12   : > { %976 = vmatprep.subr.bf16.mxu0 %v1033_v7  ;;  %v263_v12 = vld [vmem:[%s1153_s21] sm:$0xf]  ;;  %v264_v13 = vld [vmem:[%s1153_s21 + $0x8] sm:$0xf]  ;;  %v271_v14 = vld [vmem:[%s1153_s21 + $0x4] sm:$0x1]  ;;  %s1235_s13 = scalar_lea.vmem %s1264_s2, %s878_s10  ;;  %s260_s22 = scalar_lea.vmem %s1266_s4, %s1135_s5 }
  0x13   : > { %v272_v15 = vld [vmem:[%s1153_s21 + $0xc] sm:$0x1]  ;;  %v907_v16 = vcombine.low %v263_v12, %v264_v13  ;;  %v283_v18 = vshrl.u32 %v263_v12, 16  ;;  %v286_v19 = vshll.u32 %v263_v12, 16  ;;  %v292_v20 = vshll.u32 %v271_v14, 16 }
  0x14   : > { %953 = vmatpush3.bf16.msra.mxu1 %v1032_v6  ;;  %v297_v21 = vshrl.u32 %v264_v13, 16  ;;  %v1169_v22 = vld [vmem:[%s1153_s21 + $0x10] sm:$0xf]  ;;  %v300_v23 = vshll.u32 %v264_v13, 16  ;;  %v306_v24 = vshll.u32 %v272_v15, 16 }
  0x15   : > { %977 = vmatpush3.bf16.msra.mxu0 %v1033_v7  ;;  %954 = vmatprep.subr.bf16.mxu1 %v1034_v8  ;;  %v1172_v25 = vld [vmem:[%s1153_s21 + $0x18] sm:$0xf]  ;;  %v273_v26 = vld [vmem:[%s1153_s21 + $0x14] sm:$0x1]  ;;  %v285_v27 = vrot.slane %v283_v18, 4  ;;  %v288_v28 = vrot.slane %v286_v19, 5 }
  0x16   : > { %978 = vmatprep.subr.bf16.mxu0 %v1035_v9  ;;  %986 = vmatprep.mubr.bf16.mxu0 %v907_v16  ;;  %v294_v29 = vrot.slane %v292_v20, 5  ;;  %v299_v30 = vrot.slane %v297_v21, 4  ;;  %v274_v31 = vld [vmem:[%s1153_s21 + $0x1c] sm:$0x1]  ;;  %v302_v33 = vrot.slane %v300_v23, 5  ;;  %v308_v34 = vrot.slane %v306_v24, 5 }
  0x17   : > { %v311_v35 = vshrl.u32 %v1169_v22, 16  ;;  %v314_v36 = vshll.u32 %v1169_v22, 16  ;;  %v289_v37 = vor.u32 %v288_v28, %v285_v27  ;;  %v320_v38 = vshll.u32 %v273_v26, 16  ;;  %v1184_v41 = vld [vmem:[%s1153_s21 + $0x20] sm:$0xf] }
  0x18   : > { %955 = vmatpush3.bf16.msra.mxu1 %v1034_v8  ;;  %v325_v39 = vshrl.u32 %v1172_v25, 16  ;;  %v328_v40 = vshll.u32 %v1172_v25, 16  ;;  %v303_v44 = vor.u32 %v302_v33, %v299_v30  ;;  %v334_v47 = vshll.u32 %v274_v31, 16  ;;  %v1196_v48 = vld [vmem:[%s1153_s21 + $0x28] sm:$0xf] }
  0x19   : > { %979 = vmatpush3.bf16.msra.mxu0 %v1035_v9  ;;  %956 = vmatprep.subr.bf16.mxu1 %v1036_v10  ;;  %v313_v45 = vrot.slane %v311_v35, 4  ;;  %v316_v46 = vrot.slane %v314_v36, 5  ;;  %v290_v49 = vrot.slane %v289_v37, 4  ;;  %v322_v50 = vrot.slane %v320_v38, 5  ;;  %v275_v53 = vld [vmem:[%s1153_s21 + $0x24] sm:$0x1] }
  0x1a   : > { %980 = vmatprep.subr.bf16.mxu0 %v1037_v11  ;;  %v327_v51 = vrot.slane %v325_v39, 4  ;;  %v330_v52 = vrot.slane %v328_v40, 5  ;;  %v304_v55 = vrot.slane %v303_v44, 4  ;;  %v336_v57 = vrot.slane %v334_v47, 5  ;;  %v276_v61 = vld [vmem:[%s1153_s21 + $0x2c] sm:$0x1] }
  0x1b   : > { %v317_v56 = vor.u32 %v316_v46, %v313_v45  ;;  %v908_v58 = vcombine.low %v1169_v22, %v1172_v25  ;;  %v295_v59 = vsel %vm1191_vm2, %v290_v49, %v294_v29  ;;  %v339_v62 = vshrl.u32 %v1184_v41, 16  ;;  %v269_v4 = vld [vmem:[%s1153_s21 + $0x30] sm:$0xf]  ;;  %v270_v9 = vld [vmem:[%s1153_s21 + $0x38] sm:$0xf] }
  0x1c   : > { %957 = vmatpush3.bf16.msra.mxu1 %v1036_v10  ;;  %v331_v60 = vor.u32 %v330_v52, %v327_v51  ;;  %v342_v63 = vshll.u32 %v1184_v41, 16  ;;  %v309_v0 = vsel %vm1191_vm2, %v304_v55, %v308_v34  ;;  %v348_v2 = vshll.u32 %v275_v53, 16  ;;  %v277_v14 = vld [vmem:[%s1153_s21 + $0x34] sm:$0x1]  ;;  %v278_v21 = vld [vmem:[%s1153_s21 + $0x3c] sm:$0x1] }
  0x1d   : > { %981 = vmatpush3.bf16.msra.mxu0 %v1037_v11  ;;  %958 = vmatprep.subr.bf16.mxu1 %v1038_v17  ;;  %v318_v1 = vrot.slane %v317_v56, 4  ;;  %v353_v3 = vshrl.u32 %v1196_v48, 16  ;;  %v895_v5 = vcombine.low %v295_v59, %v309_v0  ;;  %v341_v7 = vrot.slane %v339_v62, 4 }
  0x1e   : > { %982 = vmatprep.subr.bf16.mxu0 %v1039_v32  ;;  %v332_v6 = vrot.slane %v331_v60, 4  ;;  %v344_v8 = vrot.slane %v342_v63, 5  ;;  %v350_v11 = vrot.slane %v348_v2, 5  ;;  %v356_v13 = vshll.u32 %v1196_v48, 16 }
  0x1f   : > { %v323_v10 = vsel %vm1191_vm2, %v318_v1, %v322_v50  ;;  %v355_v12 = vrot.slane %v353_v3, 4  ;;  %962 = vmatprep.mubr.bf16.mxu1 %v895_v5  ;;  %v909_v18 = vcombine.low %v1184_v41, %v1196_v48  ;;  %v367_v22 = vshrl.u32 %v269_v4, 16 }
  0x20   : > { %959 = vmatpush3.bf16.msra.mxu1 %v1038_v17  ;;  %v337_v15 = vsel %vm1191_vm2, %v332_v6, %v336_v57  ;;  %v345_v16 = vor.u32 %v344_v8, %v341_v7  ;;  %v362_v17 = vshll.u32 %v276_v61, 16  ;;  %v358_v20 = vrot.slane %v356_v13, 5 }
  0x21   : > { %983 = vmatpush3.bf16.msra.mxu0 %v1039_v32  ;;  %960 = vmatprep.subr.bf16.mxu1 %v1040_v42  ;;  %v896_v19 = vcombine.low %v323_v10, %v337_v15  ;;  %v370_v23 = vshll.u32 %v269_v4, 16  ;;  %v376_v26 = vshll.u32 %v277_v14, 16  ;;  %v381_v27 = vshrl.u32 %v270_v9, 16 }
  0x22   : > { %984 = vmatprep.subr.bf16.mxu0 %v1041_v54  ;;  %v346_v24 = vrot.slane %v345_v16, 4  ;;  %v364_v25 = vrot.slane %v362_v17, 5  ;;  %v359_v28 = vor.u32 %v358_v20, %v355_v12  ;;  %v369_v29 = vrot.slane %v367_v22, 4 }
  0x23   : > { %v372_v30 = vrot.slane %v370_v23, 5  ;;  %v384_v31 = vshll.u32 %v270_v9, 16  ;;  %v383_v33 = vrot.slane %v381_v27, 4  ;;  %v390_v34 = vshll.u32 %v278_v21, 16 }
  0x24   : > { %961 = vmatpush3.bf16.msra.mxu1 %v1040_v42  ;;  %v351_v32 = vsel %vm1191_vm2, %v346_v24, %v350_v11  ;;  %v360_v35 = vrot.slane %v359_v28, 4  ;;  %v378_v37 = vrot.slane %v376_v26, 5  ;;  %v910_v47 = vcombine.low %v269_v4, %v270_v9 }
  0x25   : > { %985 = vmatpush3.bf16.msra.mxu0 %v1041_v54  ;;  %v373_v36 = vor.u32 %v372_v30, %v369_v29  ;;  %v386_v38 = vrot.slane %v384_v31, 5  ;;  %v392_v42 = vrot.slane %v390_v34, 5 }
  0x26   : > { %v365_v39 = vsel %vm1191_vm2, %v360_v35, %v364_v25 }
  0x27   : > { %963 = vmatmul.mubr.bf16.vlgmr.msra.gmra.mrb[0].mxu1 %v896_v19  ;;  %v374_v40 = vrot.slane %v373_v36, 4  ;;  %v387_v41 = vor.u32 %v386_v38, %v383_v33  ;;  %v897_v44 = vcombine.low %v351_v32, %v365_v39 }
  0x28   : > { %987 = vmatmul.mubr.bf16.vlgmr.msra.gmra.mrb[0].mxu0 %v908_v58 }
  0x29   : > { %990 = vmatprep.mubr.bf16.mxu0 %v909_v18  ;;  %v379_v45 = vsel %vm1191_vm2, %v374_v40, %v378_v37  ;;  %v388_v46 = vrot.slane %v387_v41, 4  ;;  %966 = vmatprep.mubr.bf16.mxu1 %v897_v44 }
  0x2b   : > { %v393_v48 = vsel %vm1191_vm2, %v388_v46, %v392_v42 }
  0x2c   : > { %v898_v49 = vcombine.low %v379_v45, %v393_v48 }
  0x2f   : > { %967 = vmatmul.mubr.bf16.gmra.mrb[4].mxu1 %v898_v49 }
  0x30   : > { %991 = vmatmul.mubr.bf16.gmra.mrb[4].mxu0 %v910_v47 }
  0xfa   : > { %v964_v50 = vpop.f32.mrb[0].mxu1 }
  0xfb   : > { %v988_v51 = vpop.f32.mrb[0].mxu0  ;;  %v525_v43 = vpop.f32.mrb[1].mxu1 }
  0xfc   : > { %v671_v52 = vadd.f32 %v988_v51, %v964_v50  ;;  %v662_v53 = vpop.f32.mrb[1].mxu0  ;;  %v965_v54 = vpop.f32.mrb[2].mxu1 }
  0xfd   : > { %v663_v55 = vadd.f32 %v662_v53, %v525_v43  ;;  %v989_v56 = vpop.f32.mrb[2].mxu0  ;;  %v528_v57 = vpop.f32.mrb[3].mxu1 }
  0xfe   : > { %695 = vst [vmem:[%s1235_s13 + $0x10] sm:$0xff] %v671_v52  ;;  %v674_v58 = vadd.f32 %v989_v56, %v965_v54  ;;  %v665_v59 = vpop.f32.mrb[3].mxu0  ;;  %v717_v0 = vmul.f32 %v671_v52, %v671_v52 }
  0xff   : > { %693 = vst [vmem:[%s1235_s13] sm:$0xff] %v663_v55  ;;  %v666_v60 = vadd.f32 %v665_v59, %v528_v57  ;;  %v715_v61 = vmul.f32 %v663_v55, %v663_v55 }
 0x100   : > { %696 = vst [vmem:[%s1235_s13 + $0x18] sm:$0xff] %v674_v58  ;;  %v718_v6 = vmul.f32 %v674_v58, %v674_v58 }
 0x101   : > { %694 = vst [vmem:[%s1235_s13 + $0x8] sm:$0xff] %v666_v60  ;;  %v701_v62 = vadd.f32 %v666_v60, %v663_v55  ;;  %v716_v63 = vmul.f32 %v666_v60, %v666_v60 }
 0x102   : > { %v968_v4 = vpop.f32.mrb[4].mxu1 }
 0x103   : > { %v702_v1 = vadd.f32 %v701_v62, %v671_v52  ;;  %v723_v2 = vadd.f32 %v716_v63, %v715_v61  ;;  %v992_v3 = vpop.f32.mrb[4].mxu0  ;;  %v541_v9 = vpop.f32.mrb[5].mxu1 }
 0x104   : > { %v678_v5 = vpop.f32.mrb[5].mxu0  ;;  %v687_v8 = vadd.f32 %v992_v3, %v968_v4  ;;  %v969_v13 = vpop.f32.mrb[6].mxu1 }
 0x105   : > { %v724_v7 = vadd.f32 %v723_v2, %v717_v0  ;;  %v703_v10 = vadd.f32 %v702_v1, %v674_v58  ;;  %v993_v11 = vpop.f32.mrb[6].mxu0  ;;  %v679_v12 = vadd.f32 %v678_v5, %v541_v9  ;;  %v544_v17 = vpop.f32.mrb[7].mxu1 }
 0x106   : > { %v681_v14 = vpop.f32.mrb[7].mxu0  ;;  %699 = vst [vmem:[%s1235_s13 + $0x30] sm:$0xff] %v687_v8  ;;  %v690_v16 = vadd.f32 %v993_v11, %v969_v13  ;;  %v721_v24 = vmul.f32 %v687_v8, %v687_v8 }
 0x107   : > { %v725_v15 = vadd.f32 %v724_v7, %v718_v6  ;;  %697 = vst [vmem:[%s1235_s13 + $0x20] sm:$0xff] %v679_v12  ;;  %v704_v18 = vadd.f32 %v703_v10, %v679_v12  ;;  %v719_v19 = vmul.f32 %v679_v12, %v679_v12  ;;  %v682_v20 = vadd.f32 %v681_v14, %v544_v17 }
 0x108   : > { %700 = vst [vmem:[%s1235_s13 + $0x38] sm:$0xff] %v690_v16  ;;  %v722_v27 = vmul.f32 %v690_v16, %v690_v16 }
 0x109   : > { %v726_v21 = vadd.f32 %v725_v15, %v719_v19  ;;  %698 = vst [vmem:[%s1235_s13 + $0x28] sm:$0xff] %v682_v20  ;;  %v705_v22 = vadd.f32 %v704_v18, %v682_v20  ;;  %v720_v23 = vmul.f32 %v682_v20, %v682_v20 }
 0x10b   : > { %v706_v25 = vadd.f32 %v705_v22, %v687_v8  ;;  %v727_v26 = vadd.f32 %v726_v21, %v720_v23 }
 0x10d   : > { %v707_v28 = vadd.f32 %v706_v25, %v690_v16  ;;  %v728_v29 = vadd.f32 %v727_v26, %v721_v24 }
 0x10f   : > { %v708_v30 = vrot.slane %v707_v28, 4  ;;  %v729_v31 = vadd.f32 %v728_v29, %v722_v27 }
 0x111   : > { %v709_v32 = vadd.f32 %v708_v30, %v707_v28  ;;  %v730_v33 = vrot.slane %v729_v31, 4 }
 0x113   : > { %v710_v34 = vrot.slane %v709_v32, 2  ;;  %v731_v35 = vadd.f32 %v730_v33, %v729_v31 }
 0x115   : > { %v711_v36 = vadd.f32 %v710_v34, %v709_v32  ;;  %v732_v37 = vrot.slane %v731_v35, 2 }
 0x117   : > { %v712_v38 = vrot.slane %v711_v36, 1  ;;  %v733_v39 = vadd.f32 %v732_v37, %v731_v35 }
 0x119   : > { %v713_v40 = vadd.f32 %v712_v38, %v711_v36  ;;  %v734_v41 = vrot.slane %v733_v39, 1 }
 0x11b   : > { %714 = vst [vmem:[%s255_s19] sm:$0x1] %v713_v40  ;;  %v735_v42 = vadd.f32 %v734_v41, %v733_v39 }
 0x11d   : > { %736 = vst [vmem:[%s260_s22] sm:$0x1] %v735_v42 }
 0x11e PF: > { %s15_s17 = sadd.s32 1, %s1068_s17   ;;  %s1269_s15 = smov %s1064_s16 }
 0x11f   : > { %p12_p6 = scmp.ge.s32.totalorder %s15_s17, 4   ;;  %s1270_s16 = smov %s1272_s18 }
 0x121   :  { %14 = sbr.rel (!%p12_p6) target bundleno = 2 (0x2), region = 83 }

</bundles_post_ra>
